<compile_context>
chip_gen: v7x
topology: tpu7x:2x2x1
jax: 0.10.0
libtpu: 0.0.40
codegen_flags: <defaults>
</compile_context>

<pallas_src>
import functools

import jax
import jax.numpy as jnp
from jax.experimental import pallas as pl
from jax.experimental.pallas import tpu as pltpu

_LANE = 128


def _mlp_kernel(x_ref,
                w1_ref, b1_ref,
                w2_ref, b2_ref,
                w3_ref, b3_ref,
                w4_ref, b4_ref,
                o_ref):
    """Fused 4-layer MLP on one batch tile.

    x_ref : (Cin, block_b)  activations, batch on the lane axis (compute dtype)
    wN    : (out, in)       PyTorch-layout weights (so h = W @ x), compute dtype
    b1..3 : (out, 1)        biases in the elementwise dtype (bf16 on v6e/v7x, f32 on v5e)
    b4    : (1, 1)          f32 output bias
    o_ref : (1, block_b)    lane-dense f32 output tile
    """
    x = x_ref[...]                                                     # (Cin, Bt)

    # Layer 1: (16, Cin) @ (Cin, Bt), f32 accumulate; bias+ReLU in elementwise dtype.
    h = jnp.dot(w1_ref[...], x, preferred_element_type=jnp.float32)
    h = jnp.maximum(h.astype(b1_ref.dtype) + b1_ref[...], 0.0).astype(w2_ref.dtype)

    # Layer 2: (32, 16) @ (16, Bt)
    h = jnp.dot(w2_ref[...], h, preferred_element_type=jnp.float32)
    h = jnp.maximum(h.astype(b2_ref.dtype) + b2_ref[...], 0.0).astype(w3_ref.dtype)

    # Layer 3: (32, 32) @ (32, Bt)
    h = jnp.dot(w3_ref[...], h, preferred_element_type=jnp.float32)
    h = jnp.maximum(h.astype(b3_ref.dtype) + b3_ref[...], 0.0).astype(w4_ref.dtype)

    # Layer 4: (1, 32) @ (32, Bt); final bias-add stays in f32 (tiny tensor).
    out = jnp.dot(w4_ref[...], h, preferred_element_type=jnp.float32) + b4_ref[...]
    o_ref[...] = out.astype(o_ref.dtype)                               # (1, Bt)


def _elementwise_dtype(compute_dtype):
    """bf16 bias+ReLU only on chips with a bf16 VPU (v6e and newer); f32 on v5e/older."""
    if jnp.dtype(compute_dtype) == jnp.dtype(jnp.float32):
        return jnp.float32
    try:
        kind = jax.devices()[0].device_kind.lower()
    except Exception:  # no backend info at trace time -> conservative f32 path
        kind = ""
    if any(tag in kind for tag in ("v2", "v3", "v4", "v5")):
        return jnp.float32
    return compute_dtype


def _mlp_forward_core(x_t, params, *, block_b, compute_dtype):
    """x_t: (Cin, B) feature-major, already in compute_dtype."""
    Cin, B = x_t.shape

    # ---- batch tiling -------------------------------------------------------
    n_lane_tiles = pl.cdiv(B, _LANE)
    if n_lane_tiles >= 2:
        # Keep at least 2 grid steps so ("parallel",) shards across both v7x
        # TensorCores; costs at most one extra ~0.35us step on single-TC chips.
        block_b = min(block_b, (n_lane_tiles // 2) * _LANE)
    block_b = max(_LANE, (block_b // _LANE) * _LANE)          # lane-aligned
    padded_B = block_b * pl.cdiv(B, block_b)
    if padded_B != B:
        x_t = jnp.pad(x_t, ((0, 0), (0, padded_B - B)))

    # ---- operands -----------------------------------------------------------
    elem_dtype = _elementwise_dtype(compute_dtype)
    w1 = params["w1"].astype(compute_dtype)
    w2 = params["w2"].astype(compute_dtype)
    w3 = params["w3"].astype(compute_dtype)
    w4 = params["w4"].astype(compute_dtype)
    b1 = params["b1"].reshape(-1, 1).astype(elem_dtype)
    b2 = params["b2"].reshape(-1, 1).astype(elem_dtype)
    b3 = params["b3"].reshape(-1, 1).astype(elem_dtype)
    b4 = params["b4"].reshape(-1, 1).astype(jnp.float32)

    def full(a):
        nd = a.ndim
        return pl.BlockSpec(a.shape, lambda i, nd=nd: (0,) * nd)

    # ---- VMEM accounting (per tile, incl. activation temporaries) -----------
    itemsize = jnp.dtype(compute_dtype).itemsize
    gran = 32 // itemsize                                  # sublane tile: 8 f32 / 16 bf16
    pad_cin = ((Cin + gran - 1) // gran) * gran
    vmem_est = (2 * pad_cin * block_b * itemsize           # double-buffered input tiles
                + 2 * 8 * block_b * 4                      # double-buffered (1->8, Bt) f32 out
                + 6 * 32 * block_b * 4)                    # live activation temporaries
    cp_kwargs = dict(dimension_semantics=("parallel",))
    if vmem_est > 12 * 2 ** 20:                            # beyond v5e's 16 MiB scoped default
        cp_kwargs["vmem_limit_bytes"] = int(
            min(max(vmem_est + 8 * 2 ** 20, 32 * 2 ** 20), 64 * 2 ** 20))

    grid = (padded_B // block_b,)
    out_t = pl.pallas_call(
        _mlp_kernel,
        out_shape=jax.ShapeDtypeStruct((1, padded_B), jnp.float32),
        grid=grid,
        in_specs=[
            pl.BlockSpec((Cin, block_b), lambda i: (0, i)),
            full(w1), full(b1),
            full(w2), full(b2),
            full(w3), full(b3),
            full(w4), full(b4),
        ],
        out_specs=pl.BlockSpec((1, block_b), lambda i: (0, i)),
        compiler_params=pltpu.CompilerParams(**cp_kwargs),
    )(x_t, w1, b1, w2, b2, w3, b3, w4, b4)

    return out_t[:, :B].T                                   # (B, 1) f32


@functools.partial(jax.jit, static_argnames=("block_b", "compute_dtype"))
def mlp_forward(x, params, *, block_b=8192, compute_dtype=jnp.bfloat16):
    """x: (B, Cin) float32 batch-major (PyTorch layout). Returns (B, 1) float32."""
    # Single fused transpose+convert pass puts the batch on the lane axis.
    x_t = x.T.astype(compute_dtype)
    return _mlp_forward_core(x_t, params, block_b=block_b, compute_dtype=compute_dtype)


@functools.partial(jax.jit, static_argnames=("block_b", "compute_dtype"))
def mlp_forward_feature_major(x_t, params, *, block_b=8192, compute_dtype=jnp.bfloat16):
    """x_t: (Cin, B) feature-major. Skips the wrapper-side transpose HBM pass."""
    return _mlp_forward_core(x_t.astype(compute_dtype), params,
                             block_b=block_b, compute_dtype=compute_dtype)


def init_params(key, Cin):
    """nn.Linear-style init: W (out, in), b (out,), uniform(+/- 1/sqrt(fan_in))."""
    dims = [(Cin, 16), (16, 32), (32, 32), (32, 1)]
    params = {}
    for idx, (fan_in, fan_out) in enumerate(dims, start=1):
        key, kw, kb = jax.random.split(key, 3)
        bound = 1.0 / jnp.sqrt(float(fan_in))
        params[f"w{idx}"] = jax.random.uniform(
            kw, (fan_out, fan_in), jnp.float32, -bound, bound)
        params[f"b{idx}"] = jax.random.uniform(
            kb, (fan_out,), jnp.float32, -bound, bound)
    return params


def mlp_reference(x, params):
    """Pure-JAX reference with PyTorch nn.Linear semantics (x @ W.T + b)."""
    h = jnp.maximum(x @ params["w1"].T + params["b1"], 0.0)
    h = jnp.maximum(h @ params["w2"].T + params["b2"], 0.0)
    h = jnp.maximum(h @ params["w3"].T + params["b3"], 0.0)
    return h @ params["w4"].T + params["b4"]


if __name__ == "__main__":
    key = jax.random.PRNGKey(0)
    Cin = 4
    B = 200   # not a multiple of 128 -> exercises padding; clamp keeps grid = 2

    key, kx, kp, kx2 = jax.random.split(key, 4)
    x = jax.random.normal(kx, (B, Cin), jnp.float32)
    params = init_params(kp, Cin)

    ref = mlp_reference(x, params).reshape(B, 1)

    # f32 compute path: tight semantic check.  (f32 MXU matmuls may use bf16
    # passes under default precision, so the tolerance is not bit-level.)
    out_f32 = jax.block_until_ready(
        mlp_forward(x, params, compute_dtype=jnp.float32))
    assert out_f32.shape == (B, 1)
    assert jnp.allclose(out_f32, ref, atol=1e-2, rtol=1e-2), \
        float(jnp.max(jnp.abs(out_f32 - ref)))

    # Default bf16 path (f32 MXU accumulation), batch-major input.
    out_bf16 = jax.block_until_ready(mlp_forward(x, params))
    assert out_bf16.shape == (B, 1)
    assert jnp.allclose(out_bf16, ref, atol=5e-2, rtol=5e-2), \
        float(jnp.max(jnp.abs(out_bf16 - ref)))

    # Feature-major fast path (no wrapper transpose), larger ragged batch.
    B2 = 1000
    x2 = jax.random.normal(kx2, (B2, Cin), jnp.float32)
    ref2 = mlp_reference(x2, params).reshape(B2, 1)
    out2 = jax.block_until_ready(mlp_forward_feature_major(x2.T, params))
    assert out2.shape == (B2, 1)
    assert jnp.allclose(out2, ref2, atol=5e-2, rtol=5e-2), \
        float(jnp.max(jnp.abs(out2 - ref2)))

    print("KERNEL_OK")
</pallas_src>

<mosaic_0001>
module attributes {stable_mosaic.version = 11 : i64} {
  func.func @_mlp_kernel(%arg0: i32, %arg1: memref<4x128xf32, #tpu.memory_space<vmem>>, %arg2: memref<16x4xf32, #tpu.memory_space<vmem>>, %arg3: memref<16x1xf32, #tpu.memory_space<vmem>>, %arg4: memref<32x16xf32, #tpu.memory_space<vmem>>, %arg5: memref<32x1xf32, #tpu.memory_space<vmem>>, %arg6: memref<32x32xf32, #tpu.memory_space<vmem>>, %arg7: memref<32x1xf32, #tpu.memory_space<vmem>>, %arg8: memref<1x32xf32, #tpu.memory_space<vmem>>, %arg9: memref<1x1xf32, #tpu.memory_space<vmem>>, %arg10: memref<1x128xf32, #tpu.memory_space<vmem>>) attributes {dimension_semantics = [#tpu.dimension_semantics<parallel>], iteration_bounds = array<i64: 2>, scalar_prefetch = 0 : i64, scratch_operands = 0 : i64, tpu.core_type = #tpu.core_type<tc>, window_params = [{transform_indices = @transform_0, window_bounds = array<i64: 4, 128>}, {pipeline_mode = #tpu.pipeline_mode<synchronous>, transform_indices = @transform_1, window_bounds = array<i64: 16, 4>}, {pipeline_mode = #tpu.pipeline_mode<synchronous>, transform_indices = @transform_2, window_bounds = array<i64: 16, 1>}, {pipeline_mode = #tpu.pipeline_mode<synchronous>, transform_indices = @transform_3, window_bounds = array<i64: 32, 16>}, {pipeline_mode = #tpu.pipeline_mode<synchronous>, transform_indices = @transform_4, window_bounds = array<i64: 32, 1>}, {pipeline_mode = #tpu.pipeline_mode<synchronous>, transform_indices = @transform_5, window_bounds = array<i64: 32, 32>}, {pipeline_mode = #tpu.pipeline_mode<synchronous>, transform_indices = @transform_6, window_bounds = array<i64: 32, 1>}, {pipeline_mode = #tpu.pipeline_mode<synchronous>, transform_indices = @transform_7, window_bounds = array<i64: 1, 32>}, {pipeline_mode = #tpu.pipeline_mode<synchronous>, transform_indices = @transform_8, window_bounds = array<i64: 1, 1>}, {transform_indices = @transform_9, window_bounds = array<i64: 1, 128>}]} {
    %c0 = arith.constant 0 : index
    %c0_0 = arith.constant 0 : index
    %0 = vector.load %arg1[%c0, %c0_0] : memref<4x128xf32, #tpu.memory_space<vmem>>, vector<4x128xf32>
    %c0_1 = arith.constant 0 : index
    %c0_2 = arith.constant 0 : index
    %1 = vector.load %arg2[%c0_1, %c0_2] : memref<16x4xf32, #tpu.memory_space<vmem>>, vector<16x4xf32>
    %cst = arith.constant dense<0.000000e+00> : vector<16x128xf32>
    %2 = tpu.matmul %1, %0, %cst {dimension_numbers = #tpu.dot_dimension_numbers<[1], [0], [0], [1], [0, 0, 1, 1], [], []>} : vector<16x4xf32>, vector<4x128xf32>, vector<16x128xf32> -> vector<16x128xf32>
    %c0_3 = arith.constant 0 : index
    %c0_4 = arith.constant 0 : index
    %3 = vector.load %arg3[%c0_3, %c0_4] : memref<16x1xf32, #tpu.memory_space<vmem>>, vector<16x1xf32>
    %4 = vector.broadcast %3 : vector<16x1xf32> to vector<16x128xf32>
    %5 = arith.addf %2, %4 : vector<16x128xf32>
    %cst_5 = arith.constant 0.000000e+00 : f32
    %6 = vector.broadcast %cst_5 : f32 to vector<16x128xf32>
    %7 = arith.maximumf %5, %6 : vector<16x128xf32>
    %c0_6 = arith.constant 0 : index
    %c0_7 = arith.constant 0 : index
    %8 = vector.load %arg4[%c0_6, %c0_7] : memref<32x16xf32, #tpu.memory_space<vmem>>, vector<32x16xf32>
    %cst_8 = arith.constant dense<0.000000e+00> : vector<32x128xf32>
    %9 = tpu.matmul %8, %7, %cst_8 {dimension_numbers = #tpu.dot_dimension_numbers<[1], [0], [0], [1], [0, 0, 1, 1], [], []>} : vector<32x16xf32>, vector<16x128xf32>, vector<32x128xf32> -> vector<32x128xf32>
    %c0_9 = arith.constant 0 : index
    %c0_10 = arith.constant 0 : index
    %10 = vector.load %arg5[%c0_9, %c0_10] : memref<32x1xf32, #tpu.memory_space<vmem>>, vector<32x1xf32>
    %11 = vector.broadcast %10 : vector<32x1xf32> to vector<32x128xf32>
    %12 = arith.addf %9, %11 : vector<32x128xf32>
    %cst_11 = arith.constant 0.000000e+00 : f32
    %13 = vector.broadcast %cst_11 : f32 to vector<32x128xf32>
    %14 = arith.maximumf %12, %13 : vector<32x128xf32>
    %c0_12 = arith.constant 0 : index
    %c0_13 = arith.constant 0 : index
    %15 = vector.load %arg6[%c0_12, %c0_13] : memref<32x32xf32, #tpu.memory_space<vmem>>, vector<32x32xf32>
    %cst_14 = arith.constant dense<0.000000e+00> : vector<32x128xf32>
    %16 = tpu.matmul %15, %14, %cst_14 {dimension_numbers = #tpu.dot_dimension_numbers<[1], [0], [0], [1], [0, 0, 1, 1], [], []>} : vector<32x32xf32>, vector<32x128xf32>, vector<32x128xf32> -> vector<32x128xf32>
    %c0_15 = arith.constant 0 : index
    %c0_16 = arith.constant 0 : index
    %17 = vector.load %arg7[%c0_15, %c0_16] : memref<32x1xf32, #tpu.memory_space<vmem>>, vector<32x1xf32>
    %18 = vector.broadcast %17 : vector<32x1xf32> to vector<32x128xf32>
    %19 = arith.addf %16, %18 : vector<32x128xf32>
    %cst_17 = arith.constant 0.000000e+00 : f32
    %20 = vector.broadcast %cst_17 : f32 to vector<32x128xf32>
    %21 = arith.maximumf %19, %20 : vector<32x128xf32>
    %c0_18 = arith.constant 0 : index
    %c0_19 = arith.constant 0 : index
    %22 = vector.load %arg8[%c0_18, %c0_19] : memref<1x32xf32, #tpu.memory_space<vmem>>, vector<1x32xf32>
    %cst_20 = arith.constant dense<0.000000e+00> : vector<1x128xf32>
    %23 = tpu.matmul %22, %21, %cst_20 {dimension_numbers = #tpu.dot_dimension_numbers<[1], [0], [0], [1], [0, 0, 1, 1], [], []>} : vector<1x32xf32>, vector<32x128xf32>, vector<1x128xf32> -> vector<1x128xf32>
    %c0_21 = arith.constant 0 : index
    %c0_22 = arith.constant 0 : index
    %24 = vector.load %arg9[%c0_21, %c0_22] : memref<1x1xf32, #tpu.memory_space<vmem>>, vector<1x1xf32>
    %25 = vector.broadcast %24 : vector<1x1xf32> to vector<1x128xf32>
    %26 = arith.addf %23, %25 : vector<1x128xf32>
    %c0_23 = arith.constant 0 : index
    %c0_24 = arith.constant 0 : index
    %27 = vector.load %arg10[%c0_23, %c0_24] : memref<1x128xf32, #tpu.memory_space<vmem>>, vector<1x128xf32>
    tpu.vector_store %arg10[%c0_23, %c0_24], %26 {strides = array<i32>} : memref<1x128xf32, #tpu.memory_space<vmem>>, vector<1x128xf32>,
    return
  }
  func.func @transform_0(%arg0: i32) -> (i32, i32) {
    %c0_i32 = arith.constant 0 : i32
    %c0_i32_0 = arith.constant 0 : i32
    return %c0_i32, %arg0 : i32, i32
  }
  func.func @transform_1(%arg0: i32) -> (i32, i32) {
    %c0_i32 = arith.constant 0 : i32
    %c0_i32_0 = arith.constant 0 : i32
    %c0_i32_1 = arith.constant 0 : i32
    return %c0_i32, %c0_i32_0 : i32, i32
  }
  func.func @transform_2(%arg0: i32) -> (i32, i32) {
    %c0_i32 = arith.constant 0 : i32
    %c0_i32_0 = arith.constant 0 : i32
    %c0_i32_1 = arith.constant 0 : i32
    return %c0_i32, %c0_i32_0 : i32, i32
  }
  func.func @transform_3(%arg0: i32) -> (i32, i32) {
    %c0_i32 = arith.constant 0 : i32
    %c0_i32_0 = arith.constant 0 : i32
    %c0_i32_1 = arith.constant 0 : i32
    return %c0_i32, %c0_i32_0 : i32, i32
  }
  func.func @transform_4(%arg0: i32) -> (i32, i32) {
    %c0_i32 = arith.constant 0 : i32
    %c0_i32_0 = arith.constant 0 : i32
    %c0_i32_1 = arith.constant 0 : i32
    return %c0_i32, %c0_i32_0 : i32, i32
  }
  func.func @transform_5(%arg0: i32) -> (i32, i32) {
    %c0_i32 = arith.constant 0 : i32
    %c0_i32_0 = arith.constant 0 : i32
    %c0_i32_1 = arith.constant 0 : i32
    return %c0_i32, %c0_i32_0 : i32, i32
  }
  func.func @transform_6(%arg0: i32) -> (i32, i32) {
    %c0_i32 = arith.constant 0 : i32
    %c0_i32_0 = arith.constant 0 : i32
    %c0_i32_1 = arith.constant 0 : i32
    return %c0_i32, %c0_i32_0 : i32, i32
  }
  func.func @transform_7(%arg0: i32) -> (i32, i32) {
    %c0_i32 = arith.constant 0 : i32
    %c0_i32_0 = arith.constant 0 : i32
    %c0_i32_1 = arith.constant 0 : i32
    return %c0_i32, %c0_i32_0 : i32, i32
  }
  func.func @transform_8(%arg0: i32) -> (i32, i32) {
    %c0_i32 = arith.constant 0 : i32
    %c0_i32_0 = arith.constant 0 : i32
    %c0_i32_1 = arith.constant 0 : i32
    return %c0_i32, %c0_i32_0 : i32, i32
  }
  func.func @transform_9(%arg0: i32) -> (i32, i32) {
    %c0_i32 = arith.constant 0 : i32
    %c0_i32_0 = arith.constant 0 : i32
    return %c0_i32, %arg0 : i32, i32
  }
}

</mosaic_0001>

<bundles_post_ra>
// kernel: mlp_forward.1
= control target key start
LH: loop header
LB: loop body
LE: loop exit
PB: predicated region body
PF: predicated region fallthrough
CT: control target
= control target key end

     0   :  { %s1002_s11 = smov 0   ;;  %s1097_s0 = inlined_call_operand.vmem [shape: f32[4,256], index: 0, kind: input, shape index: {}]   ;;  %s1098_s1 = inlined_call_operand.vmem [shape: f32[16,4], index: 1, kind: input, shape index: {}]   ;;  %s1099_s2 = inlined_call_operand.vmem [shape: f32[16,1], index: 2, kind: input, shape index: {}]   ;;  %s1100_s3 = inlined_call_operand.vmem [shape: f32[32,16], index: 3, kind: input, shape index: {}]   ;;  %s1101_s4 = inlined_call_operand.vmem [shape: f32[32,1], index: 4, kind: input, shape index: {}]   ;;  %s1102_s5 = inlined_call_operand.vmem [shape: f32[32,32], index: 5, kind: input, shape index: {}]   ;;  %s1103_s6 = inlined_call_operand.vmem [shape: f32[32,1], index: 6, kind: input, shape index: {}]   ;;  %s1104_s7 = inlined_call_operand.vmem [shape: f32[1,32], index: 7, kind: input, shape index: {}]   ;;  %s1105_s8 = inlined_call_operand.<no memory space> [shape: f32[1,1], index: 8, kind: input, shape index: {}]   ;;  %s1106_s9 = inlined_call_operand.vmem [shape: f32[1,256], index: 9, kind: output, shape index: {}]  }
   0x1   :  { %v14_v0 = vstv %s1105_s8 }
   0x2   :  { %15 = vst [vmem:[#allocation2] sm:$0x1] %v14_v0 }
   0x3 LB: > { %s823_s12 = sadd.s32 4294967295, %s943_s11   ;;  %p827_p0 = scmp.ge.s32.totalorder %s943_s11, 1  ;;  %s943_s11 = sphi %s1002_s11, %s21_s11  }
   0x4   : > { %p288_p1 = scmp.lt.s32.totalorder %s943_s11, 3 }
   0x6   : > { %p289_p2 = pnand %p827_p0, %p288_p1 }
   0x7   : > { %p321_p3 = scmp.lt.s32.totalorder (!%p289_p2), %s823_s12, 1  ;;  %v329_v1 = vld [vmem:[%s1098_s1] sm:$0xff] (!%p289_p2)  ;;  %vm343_vm0 = vcmask (!%p289_p2), 31744   ;;  %v945_v2 = vmov (!%p289_p2), 0   ;;  %v332_v4 = vld [vmem:[%s1099_s2 + $0x8] sm:$0xff] (!%p289_p2)  ;;  %vm350_vm1 = vcmask (!%p289_p2), 1043456  }
   0x8   : > { %292 = sbr.rel (%p289_p2) target bundleno = 912 (0x390), region = 56  ;;  %867 = vmatprep.mubr.msk.f32.mxu0 (!%p289_p2), %vm343_vm0, %v329_v1  ;;  %935 = vset.pattern.permute.xlu0 (!%p289_p2), %v945_v2  ;;  %v331_v3 = vld [vmem:[%s1099_s2] sm:$0xff] (!%p289_p2)  ;;  %v330_v6 = vld [vmem:[%s1098_s1 + $0x8] sm:$0xff] (!%p289_p2)  ;;  %v437_v7 = vld [vmem:[%s1101_s4 + $0x10] sm:$0xff] (!%p289_p2)  ;;  %vm459_vm2 = vcmask (!%p289_p2), 130048   ;;  %vm589_vm3 = vcmask (!%p289_p2), 261120  }
   0x9   : > { %335 = vperm.xlu0 (!%p289_p2), %935, %v331_v3   ;;  %936 = vset.pattern.permute.xlu1 (!%p289_p2), %v945_v2  ;;  %v565_v8 = vld [vmem:[%s1103_s6] sm:$0xff] (!%p289_p2)  ;;  %v567_v9 = vld [vmem:[%s1103_s6 + $0x10] sm:$0xff] (!%p289_p2)  ;;  %v436_v13 = vld [vmem:[%s1101_s4 + $0x8] sm:$0xff] (!%p289_p2)  ;;  %v946_v51 = vmov (!%p289_p2), 0.0|0.0   ;;  %vm947_vm4 = vmmov (!%p289_p2), 0   ;;  %v948_v52 = vmov (!%p289_p2), 0.0  }
   0xa   : > { %v692_v10 = vld [vmem:[#allocation2] sm:$0x1] (!%p289_p2)  ;;  %v438_v14 = vld [vmem:[%s1101_s4 + $0x18] sm:$0xff] (!%p289_p2)  ;;  %v566_v15 = vld [vmem:[%s1103_s6 + $0x8] sm:$0xff] (!%p289_p2) }
   0xb   : > { %v431_v11 = vld [vmem:[%s1100_s3] sm:$0xff] (!%p289_p2)  ;;  %v568_v16 = vld [vmem:[%s1103_s6 + $0x18] sm:$0xff] (!%p289_p2)  ;;  %v432_v26 = vld [vmem:[%s1100_s3 + $0x8] sm:$0xff] (!%p289_p2) }
   0xc   : > { %874 = vmatprep.mubr.msk.f32.mxu1 (!%p289_p2), %vm459_vm2, %v431_v11  ;;  %v435_v12 = vld [vmem:[%s1101_s4] sm:$0xff] (!%p289_p2)  ;;  %v433_v27 = vld [vmem:[%s1100_s3 + $0x10] sm:$0xff] (!%p289_p2)  ;;  %v434_v28 = vld [vmem:[%s1100_s3 + $0x18] sm:$0xff] (!%p289_p2) }
   0xd   : > { %340 = vperm.xlu0 (!%p289_p2), %935, %v332_v4   ;;  %441 = vperm.xlu1 (!%p289_p2), %936, %v435_v12   ;;  %v561_v29 = vld [vmem:[%s1102_s5] sm:$0xff] (!%p289_p2)  ;;  %v562_v48 = vld [vmem:[%s1102_s5 + $0x8] sm:$0xff] (!%p289_p2)  ;;  %v563_v49 = vld [vmem:[%s1102_s5 + $0x10] sm:$0xff] (!%p289_p2) }
   0xe   : > { %v564_v50 = vld [vmem:[%s1102_s5 + $0x18] sm:$0xff] (!%p289_p2) }
   0xf   : > { %s1108_s12 = smov (!%p321_p3, %s823_s12), 1 }
  0x10   : > { %s828_s18 = sshll.u32 %s1108_s12, 2  ;;  %s327_s20 = scalar_lea.vmem %s1106_s9, %s1108_s12 }
  0x11   : > { %s324_s21 = scalar_lea.vmem %s1097_s0, %s828_s18  ;;  %451 = vperm.xlu0 %935, %v437_v7   ;;  %446 = vperm.xlu1 %936, %v436_v13   ;;  %v691_v7 = vld [vmem:[%s1104_s7] sm:$0x1] }
  0x12   : > { %v328_v5 = vld [vmem:[%s324_s21] sm:$0xf] }
  0x13   : > { %865 = vmatprep.subr.msk.mxu0 %vm350_vm1, %v328_v5 }
  0x14   : > { %866 = vmatpush3.msk.msra.mxu0 %vm350_vm1, %v328_v5 }
  0x15   : > { %868 = vmatmul.mubr.msk.f32.vlgmr.msra.gmra.mrb[0].mxu0 %vm343_vm0, %v330_v6  ;;  %571 = vperm.xlu0 %935, %v565_v8   ;;  %v698_v8 = vlaneseq }
  0x16   : > { %456 = vperm.xlu1 %936, %v438_v14   ;;  %888 = vmatprep.mubr.msk.f32.mxu0 %vm589_vm3, %v561_v29 }
  0x19   : > { %581 = vperm.xlu0 %935, %v567_v9   ;;  %v699_v9 = vshrl.u32 %v698_v8, 7 }
  0x1a   : > { %576 = vperm.xlu1 %936, %v566_v15  }
  0x1d   : > { %695 = vperm.xlu0 %935, %v692_v10   ;;  %v700_v10 = vsub.s32 0, %v699_v9 }
  0x1e   : > { %586 = vperm.xlu1 %936, %v568_v16  }
  0x88   : > { %v336_v17 = vpop.permute.xlu0 %335 }
  0x8c   : > { %v341_v18 = vpop.permute.xlu0 %340  ;;  %v442_v30 = vpop.permute.xlu1 %441 }
  0x90   : > { %v447_v31 = vpop.permute.xlu1 %446  ;;  %v452_v40 = vpop.permute.xlu0 %451 }
  0x94   : > { %v572_v54 = vpop.permute.xlu0 %571 }
  0x95   : > { %v457_v37 = vpop.permute.xlu1 %456 }
  0x98   : > { %v582_v63 = vpop.permute.xlu0 %581 }
  0x99   : > { %v577_v53 = vpop.permute.xlu1 %576 }
  0x9c   : > { %v696_v11 = vpop.permute.xlu0 %695 }
  0x9d   : > { %v587_v60 = vpop.permute.xlu1 %586  ;;  %v701_v12 = vrot.slane %v696_v11, %v700_v10 }
  0xe8   : > { %v869_v19 = vpop.f32.mrb[0].mxu0 }
  0xe9   : > { %v426_v20 = vadd.f32 %v869_v19, %v341_v18  ;;  %v420_v21 = vpop.f32.mrb[1].mxu0 }
  0xea   : > { %v421_v22 = vadd.f32 %v420_v21, %v336_v17 }
  0xeb   : > { %v430_v23 = vmax.f32 %v426_v20, 0.0 }
  0xec   : > { %v429_v24 = vmax.f32 %v421_v22, 0.0 }
  0xee   : > { %v905_v25 = vpack.c.bf16 %v430_v23, %v429_v24 }
  0xf0   : > { %906 = vmatprep.subr.bf16.mxu1 %v905_v25 }
  0xf1   : > { %908 = vmatpush3.bf16.msra.mxu1 %v905_v25 }
  0xf2   : > { %917 = vmatprep.subr.bf16.mxu1 %v946_v51 }
  0xf4   : > { %875 = vmatmul.mubr.msk.f32.vlgmr.msra.gmra.mrb[0].mxu1 %vm459_vm2, %v432_v26 }
  0xf5   : > { %877 = vmatprep.mubr.msk.f32.mxu1 %vm459_vm2, %v433_v27 }
  0xf8   : > { %878 = vmatmul.mubr.msk.f32.gmra.mrb[2].mxu1 %vm459_vm2, %v434_v28 }
  0xf9   : > { %902 = vmatprep.mubr.msk.f32.mxu1 %vm947_vm4, %v948_v52 }
 0x1c7   : > { %v876_v32 = vpop.f32.mrb[0].mxu1 }
 0x1c8   : > { %v544_v33 = vadd.f32 %v876_v32, %v447_v31  ;;  %v538_v34 = vpop.f32.mrb[1].mxu1 }
 0x1c9   : > { %v539_v35 = vadd.f32 %v538_v34, %v442_v30 }
 0x1ca   : > { %v558_v36 = vmax.f32 %v544_v33, 0.0 }
 0x1cb   : > { %v557_v38 = vmax.f32 %v539_v35, 0.0  ;;  %v879_v39 = vpop.f32.mrb[2].mxu1 }
 0x1cc   : > { %v554_v41 = vadd.f32 %v879_v39, %v457_v37  ;;  %v548_v42 = vpop.f32.mrb[3].mxu1 }
 0x1cd   : > { %v909_v43 = vpack.c.bf16 %v558_v36, %v557_v38  ;;  %v549_v44 = vadd.f32 %v548_v42, %v452_v40 }
 0x1ce   : > { %v560_v45 = vmax.f32 %v554_v41, 0.0 }
 0x1cf   : > { %v559_v46 = vmax.f32 %v549_v44, 0.0  ;;  %910 = vmatprep.subr.bf16.mxu0 %v909_v43 }
 0x1d0   : > { %912 = vmatpush3.bf16.msra.mxu0 %v909_v43 }
 0x1d1   : > { %v913_v47 = vpack.c.bf16 %v560_v45, %v559_v46 }
 0x1d3   : > { %914 = vmatprep.subr.bf16.mxu0 %v913_v47 }
 0x1d4   : > { %916 = vmatpush3.bf16.msra.mxu0 %v913_v47 }
 0x1d7   : > { %889 = vmatmul.mubr.msk.f32.vlgmr.msra.gmra.mrb[2].mxu0 %vm589_vm3, %v562_v48 }
 0x1d8   : > { %891 = vmatprep.mubr.msk.f32.mxu0 %vm589_vm3, %v563_v49 }
 0x1db   : > { %892 = vmatmul.mubr.msk.f32.gmra.mrb[4].mxu0 %vm589_vm3, %v564_v50 }
 0x2aa   : > { %v890_v55 = vpop.f32.mrb[2].mxu0 }
 0x2ab   : > { %v674_v56 = vadd.f32 %v890_v55, %v577_v53  ;;  %v668_v57 = vpop.f32.mrb[3].mxu0 }
 0x2ac   : > { %v669_v58 = vadd.f32 %v668_v57, %v572_v54 }
 0x2ad   : > { %v688_v59 = vmax.f32 %v674_v56, 0.0 }
 0x2ae   : > { %v687_v61 = vmax.f32 %v669_v58, 0.0  ;;  %v893_v62 = vpop.f32.mrb[4].mxu0 }
 0x2af   : > { %v684_v0 = vadd.f32 %v893_v62, %v587_v60  ;;  %v678_v1 = vpop.f32.mrb[5].mxu0 }
 0x2b0   : > { %v918_v2 = vpack.c.bf16 %v688_v59, %v687_v61  ;;  %v679_v3 = vadd.f32 %v678_v1, %v582_v63 }
 0x2b1   : > { %v690_v4 = vmax.f32 %v684_v0, 0.0 }
 0x2b2   : > { %v689_v5 = vmax.f32 %v679_v3, 0.0  ;;  %919 = vmatpush3.bf16.msra.mxu1 %v918_v2 }
 0x2b3   : > { %920 = vmatprep.subr.bf16.mxu1 %v946_v51 }
 0x2b4   : > { %v921_v6 = vpack.c.bf16 %v690_v4, %v689_v5 }
 0x2b6   : > { %922 = vmatpush3.bf16.msra.mxu1 %v921_v6 }
 0x2b9   : > { %903 = vmatmul.mubr.msk.f32.vlgmr.msra.gmra.mrb[4].mxu1 %vm589_vm3, %v691_v7 }
 0x38c   : > { %v771_v13 = vpop.f32.mrb[4].mxu1 }
 0x38d   : > { %v772_v14 = vadd.f32 %v771_v13, %v701_v12  ;;  %v904_v15 = vpop.f32.mrb[5].mxu1 }
 0x38f   : > { %775 = vst [vmem:[%s327_s20] sm:$0x1] %v772_v14 }
 0x390 PF: > { %s21_s11 = sadd.s32 1, %s943_s11  }
 0x391   : > { %p18_p4 = scmp.ge.s32.totalorder %s21_s11, 4  }
 0x393   :  { %20 = sbr.rel (!%p18_p4) target bundleno = 3 (0x3), region = 86 }

</bundles_post_ra>
